<compile_context>
chip_gen: v7x
topology: tpu7x:2x2x1
jax: 0.10.0
libtpu: 0.0.40
codegen_flags: <defaults>
</compile_context>

<pallas_src>
import functools

import jax
import jax.numpy as jnp
from jax.experimental import pallas as pl
from jax.experimental.pallas import tpu as pltpu

NUM_CLASSES_1 = 168
NUM_CLASSES_2 = 11
NUM_CLASSES_3 = 7
N_TOTAL = NUM_CLASSES_1 + NUM_CLASSES_2 + NUM_CLASSES_3   # 186


def _round_up(x, m):
    return (x + m - 1) // m * m


def _fcn_fused_heads_kernel(x_ref, w_ref, b_ref, o_ref, acc_ref):
    """One K-step of the fused (x @ [W1|W2|W3]) matmul with f32 accumulation."""
    k = pl.program_id(0)

    @pl.when(k == 0)
    def _init():
        acc_ref[...] = jnp.zeros_like(acc_ref)

    # bf16 x bf16 -> f32 accumulate on the MXU (single 256-lane pass per K tile).
    acc_ref[...] += jnp.dot(x_ref[...], w_ref[...],
                            preferred_element_type=jnp.float32)

    @pl.when(k == pl.num_programs(0) - 1)
    def _finalize():
        # Bias added once, in the finalize path only; lane-dense unmasked store.
        o_ref[...] = acc_ref[...] + b_ref[...]


@functools.partial(jax.jit, static_argnames=("tk",))
def fcn_forward(x_nchw, params, *, tk=2048):
    """FCN.forward: base (identity) -> flatten -> three fused linear heads."""
    B = x_nchw.shape[0]
    # base(x) is identity; nn.Flatten is row-major (matches torch NCHW flatten).
    x_flat = x_nchw.reshape(B, -1)
    in_f = x_flat.shape[1]

    w1, b1 = params["w1"], params["b1"]
    w2, b2 = params["w2"], params["b2"]
    w3, b3 = params["w3"], params["b3"]
    n1, n2, n3 = w1.shape[1], w2.shape[1], w3.shape[1]
    n_tot = n1 + n2 + n3

    # Lane-dense fused output width (186 -> 256: one full MXU pass on v6e/v7x,
    # two clean 128-lane passes on v5e).
    n_pad = _round_up(n_tot, 128)

    # K tile: multiple of 128 (lane/sublane constraints), capped by padded in_f.
    tk = max(128, _round_up(tk, 128))
    tk = min(tk, _round_up(in_f, 128))
    k_pad = _round_up(in_f, tk)
    nk = k_pad // tk

    # M padded to 16 rows: unmasked bf16 sublane loads and f32 stores.
    m_pad = _round_up(max(B, 1), 16)

    # Fused, zero-padded bf16 weight (k_pad, n_pad) and f32 bias (1, n_pad).
    w_fused = jnp.zeros((k_pad, n_pad), jnp.bfloat16)
    w_fused = w_fused.at[:in_f, :n1].set(w1.astype(jnp.bfloat16))
    w_fused = w_fused.at[:in_f, n1:n1 + n2].set(w2.astype(jnp.bfloat16))
    w_fused = w_fused.at[:in_f, n1 + n2:n_tot].set(w3.astype(jnp.bfloat16))

    b_fused = jnp.zeros((1, n_pad), jnp.float32)
    b_fused = b_fused.at[:, :n1].set(b1.astype(jnp.float32).reshape(1, n1))
    b_fused = b_fused.at[:, n1:n1 + n2].set(b2.astype(jnp.float32).reshape(1, n2))
    b_fused = b_fused.at[:, n1 + n2:n_tot].set(b3.astype(jnp.float32).reshape(1, n3))

    # Zero-padded bf16 activations (m_pad, k_pad); padded rows/cols contribute 0.
    x_p = jnp.zeros((m_pad, k_pad), jnp.bfloat16)
    x_p = x_p.at[:B, :in_f].set(x_flat.astype(jnp.bfloat16))

    grid_spec = pltpu.PrefetchScalarGridSpec(
        num_scalar_prefetch=0,
        grid=(nk,),
        in_specs=[
            pl.BlockSpec((m_pad, tk), lambda k: (0, k)),    # activations: K-streamed
            pl.BlockSpec((tk, n_pad), lambda k: (k, 0)),    # fused weight: K-streamed
            pl.BlockSpec((1, n_pad), lambda k: (0, 0)),     # fused bias: resident
        ],
        out_specs=pl.BlockSpec((m_pad, n_pad), lambda k: (0, 0)),  # accumulator-resident
        scratch_shapes=[pltpu.VMEM((m_pad, n_pad), jnp.float32)],
    )

    flops = 2 * m_pad * k_pad * n_pad
    bytes_accessed = (m_pad * k_pad * 2          # bf16 activations
                      + k_pad * n_pad * 2        # bf16 fused weight
                      + n_pad * 4                # f32 fused bias
                      + m_pad * n_pad * 4)       # f32 output

    out = pl.pallas_call(
        _fcn_fused_heads_kernel,
        out_shape=jax.ShapeDtypeStruct((m_pad, n_pad), jnp.float32),
        grid_spec=grid_spec,
        compiler_params=pltpu.CompilerParams(
            # Single grid axis is the K reduction -> arbitrary (output is an accumulator).
            dimension_semantics=("arbitrary",),
            # Tiles are sized well under v5e's 16 MiB default; 32 MiB is headroom and
            # safe on v7x's 64 MiB physical VMEM.
            vmem_limit_bytes=32 * 1024 * 1024,
        ),
        cost_estimate=pl.CostEstimate(
            flops=flops, transcendentals=0, bytes_accessed=bytes_accessed),
    )(x_p, w_fused, b_fused)

    # Slice the three heads back out of the lane-dense fused output.
    o1 = out[:B, :n1]
    o2 = out[:B, n1:n1 + n2]
    o3 = out[:B, n1 + n2:n_tot]
    return o1, o2, o3


def init_params(key, in_f):
    """Deterministic init mimicking nn.Linear default (uniform +-1/sqrt(in_f))."""
    ks = jax.random.split(key, 6)
    bound = 1.0 / jnp.sqrt(jnp.float32(in_f))

    def u(k, shape):
        return jax.random.uniform(k, shape, jnp.float32, -bound, bound)

    return {
        # weights stored as (in_f, out_f) so the kernel does x @ W directly
        "w1": u(ks[0], (in_f, NUM_CLASSES_1)),
        "b1": u(ks[1], (1, NUM_CLASSES_1)),
        "w2": u(ks[2], (in_f, NUM_CLASSES_2)),
        "b2": u(ks[3], (1, NUM_CLASSES_2)),
        "w3": u(ks[4], (in_f, NUM_CLASSES_3)),
        "b3": u(ks[5], (1, NUM_CLASSES_3)),
    }


if __name__ == "__main__":
    key = jax.random.PRNGKey(0)
    k_x, k_p = jax.random.split(key)

    # Small NCHW input: batch=2, channels=4, spatial=16 -> in_f = 4*16*16 = 1024
    B, C, H, W = 2, 4, 16, 16
    in_f = C * H * W
    x = jax.random.normal(k_x, (B, C, H, W), jnp.float32)
    params = init_params(k_p, in_f)

    # tk=256 -> 4 K-steps, exercising the gridded accumulate/finalize path.
    out1, out2, out3 = fcn_forward(x, params, tk=256)
    jax.block_until_ready((out1, out2, out3))

    assert out1.shape == (B, NUM_CLASSES_1)
    assert out2.shape == (B, NUM_CLASSES_2)
    assert out3.shape == (B, NUM_CLASSES_3)

    # Cross-check against a plain-JAX reference using the same bf16-cast inputs
    # (f32 accumulation), which is what the kernel computes numerically.
    x_bf = x.reshape(B, -1).astype(jnp.bfloat16).astype(jnp.float32)

    def ref_head(w, b):
        return x_bf @ w.astype(jnp.bfloat16).astype(jnp.float32) + b

    ref1 = ref_head(params["w1"], params["b1"])
    ref2 = ref_head(params["w2"], params["b2"])
    ref3 = ref_head(params["w3"], params["b3"])
    assert jnp.allclose(out1, ref1, atol=1e-2, rtol=1e-2)
    assert jnp.allclose(out2, ref2, atol=1e-2, rtol=1e-2)
    assert jnp.allclose(out3, ref3, atol=1e-2, rtol=1e-2)

    print("KERNEL_OK")
</pallas_src>

<mosaic_0001>
module attributes {stable_mosaic.version = 11 : i64} {
  func.func @_fcn_fused_heads_kernel(%arg0: i32, %arg1: memref<16x256xbf16, #tpu.memory_space<vmem>>, %arg2: memref<256x256xbf16, #tpu.memory_space<vmem>>, %arg3: memref<1x256xf32, #tpu.memory_space<vmem>>, %arg4: memref<16x256xf32, #tpu.memory_space<vmem>>, %arg5: memref<16x256xf32, #tpu.memory_space<vmem>>) attributes {dimension_semantics = [#tpu.dimension_semantics<arbitrary>], iteration_bounds = array<i64: 4>, scalar_prefetch = 0 : i64, scratch_operands = 1 : i64, tpu.core_type = #tpu.core_type<tc>, window_params = [{transform_indices = @transform_0, window_bounds = array<i64: 16, 256>}, {transform_indices = @transform_1, window_bounds = array<i64: 256, 256>}, {pipeline_mode = #tpu.pipeline_mode<synchronous>, transform_indices = @transform_2, window_bounds = array<i64: 1, 256>}, {pipeline_mode = #tpu.pipeline_mode<synchronous>, transform_indices = @transform_3, window_bounds = array<i64: 16, 256>}]} {
    %c0_i32 = arith.constant 0 : i32
    %0 = arith.cmpi eq, %arg0, %c0_i32 : i32
    %1 = arith.extui %0 : i1 to i32
    %c0_i32_0 = arith.constant 0 : i32
    %2 = arith.cmpi ne, %1, %c0_i32_0 : i32
    scf.if %2 {
      %cst_9 = arith.constant 0.000000e+00 : f32
      %12 = vector.broadcast %cst_9 : f32 to vector<16x256xf32>
      %c0_10 = arith.constant 0 : index
      %c0_11 = arith.constant 0 : index
      %13 = vector.load %arg5[%c0_10, %c0_11] : memref<16x256xf32, #tpu.memory_space<vmem>>, vector<16x256xf32>
      tpu.vector_store %arg5[%c0_10, %c0_11], %12 {strides = array<i32>} : memref<16x256xf32, #tpu.memory_space<vmem>>, vector<16x256xf32>,
    } else {
    }
    %c0 = arith.constant 0 : index
    %c0_1 = arith.constant 0 : index
    %3 = vector.load %arg5[%c0, %c0_1] : memref<16x256xf32, #tpu.memory_space<vmem>>, vector<16x256xf32>
    %c0_2 = arith.constant 0 : index
    %c0_3 = arith.constant 0 : index
    %4 = vector.load %arg1[%c0_2, %c0_3] : memref<16x256xbf16, #tpu.memory_space<vmem>>, vector<16x256xbf16>
    %c0_4 = arith.constant 0 : index
    %c0_5 = arith.constant 0 : index
    %5 = vector.load %arg2[%c0_4, %c0_5] : memref<256x256xbf16, #tpu.memory_space<vmem>>, vector<256x256xbf16>
    %cst = arith.constant dense<0.000000e+00> : vector<16x256xf32>
    %6 = tpu.matmul %4, %5, %cst {dimension_numbers = #tpu.dot_dimension_numbers<[1], [0], [0], [1], [0, 0, 1, 1], [], []>} : vector<16x256xbf16>, vector<256x256xbf16>, vector<16x256xf32> -> vector<16x256xf32>
    %7 = arith.addf %3, %6 : vector<16x256xf32>
    %c0_6 = arith.constant 0 : index
    %c0_7 = arith.constant 0 : index
    %8 = vector.load %arg5[%c0_6, %c0_7] : memref<16x256xf32, #tpu.memory_space<vmem>>, vector<16x256xf32>
    tpu.vector_store %arg5[%c0_6, %c0_7], %7 {strides = array<i32>} : memref<16x256xf32, #tpu.memory_space<vmem>>, vector<16x256xf32>,
    %c3_i32 = arith.constant 3 : i32
    %9 = arith.cmpi eq, %arg0, %c3_i32 : i32
    %10 = arith.extui %9 : i1 to i32
    %c0_i32_8 = arith.constant 0 : i32
    %11 = arith.cmpi ne, %10, %c0_i32_8 : i32
    scf.if %11 {
      %c0_9 = arith.constant 0 : index
      %c0_10 = arith.constant 0 : index
      %12 = vector.load %arg5[%c0_9, %c0_10] : memref<16x256xf32, #tpu.memory_space<vmem>>, vector<16x256xf32>
      %c0_11 = arith.constant 0 : index
      %c0_12 = arith.constant 0 : index
      %13 = vector.load %arg3[%c0_11, %c0_12] : memref<1x256xf32, #tpu.memory_space<vmem>>, vector<1x256xf32>
      %14 = vector.broadcast %13 : vector<1x256xf32> to vector<16x256xf32>
      %15 = arith.addf %12, %14 : vector<16x256xf32>
      %c0_13 = arith.constant 0 : index
      %c0_14 = arith.constant 0 : index
      %16 = vector.load %arg4[%c0_13, %c0_14] : memref<16x256xf32, #tpu.memory_space<vmem>>, vector<16x256xf32>
      tpu.vector_store %arg4[%c0_13, %c0_14], %15 {strides = array<i32>} : memref<16x256xf32, #tpu.memory_space<vmem>>, vector<16x256xf32>,
    } else {
    }
    return
  }
  func.func @transform_0(%arg0: i32) -> (i32, i32) {
    %c0_i32 = arith.constant 0 : i32
    %c0_i32_0 = arith.constant 0 : i32
    return %c0_i32, %arg0 : i32, i32
  }
  func.func @transform_1(%arg0: i32) -> (i32, i32) {
    %c0_i32 = arith.constant 0 : i32
    %c0_i32_0 = arith.constant 0 : i32
    return %arg0, %c0_i32 : i32, i32
  }
  func.func @transform_2(%arg0: i32) -> (i32, i32) {
    %c0_i32 = arith.constant 0 : i32
    %c0_i32_0 = arith.constant 0 : i32
    %c0_i32_1 = arith.constant 0 : i32
    return %c0_i32, %c0_i32_0 : i32, i32
  }
  func.func @transform_3(%arg0: i32) -> (i32, i32) {
    %c0_i32 = arith.constant 0 : i32
    %c0_i32_0 = arith.constant 0 : i32
    %c0_i32_1 = arith.constant 0 : i32
    return %c0_i32, %c0_i32_0 : i32, i32
  }
}

</mosaic_0001>

<bundles_post_ra>
// kernel: fcn_forward.1
= control target key start
LH: loop header
LB: loop body
LE: loop exit
PB: predicated region body
PF: predicated region fallthrough
CT: control target
= control target key end

     0   :  { %s734_s12 = smov 0   ;;  %s736_s13 = smov 0   ;;  %s835_s0 = inlined_call_operand.vmem [shape: bf16[16,1024], index: 0, kind: input, shape index: {}]   ;;  %s836_s1 = inlined_call_operand.vmem [shape: bf16[1024,256], index: 1, kind: input, shape index: {}]   ;;  %s837_s2 = inlined_call_operand.vmem [shape: f32[1,256], index: 2, kind: input, shape index: {}]   ;;  %s838_s3 = inlined_call_operand.vmem [shape: f32[16,256], index: 3, kind: output, shape index: {}]  }
   0x1   :  { %s738_s14 = smov 0  }
   0x2 LB: > { %s747_s15 = sadd.s32 4294967295, %s711_s14   ;;  %s749_s16 = sadd.s32 1, %s711_s14   ;;  %s711_s14 = sphi %s738_s14, %s841_s14   ;;  %s707_s13 = sphi %s736_s13, %s840_s13   ;;  %s703_s12 = sphi %s734_s12, %s839_s12  }
   0x3   : > { %s17_s17 = ssub.s32 %s711_s14, %s749_s16  ;;  %s20_s18 = sadd.s32 1, %s707_s13 }
   0x4   : > { %p18_p0 = scmp.eq.s32.totalorder %s17_s17, 0  ;;  %p27_p1 = scmp.ne.s32.totalorder %s707_s13, %s703_s12 }
   0x5   : > { %p28_p2 = scmp.eq.s32.totalorder %s711_s14, 0  ;;  %p564_p4 = scmp.ge.s32.totalorder %s711_s14, 4 }
   0x6   : > { %s756_s19 = scalar_select %p18_p0, %s707_s13, %s20_s18  }
   0x7   : > { %p29_p3 = por %p28_p2, %p27_p1  ;;  %124 = sbr.rel (%p564_p4) target bundleno = 21 (0x15), region = 20 }
   0xe   : > { %127 = sbr.rel (!%p29_p3) target bundleno = 21 (0x15), region = 24  ;;  %s129_s20 = sand.u32 (%p29_p3), 1, %s707_s13  }
   0xf   : > { %s611_s21 = sshll.u32 (%p29_p3), %s711_s14, 3  ;;  %s565_s22 = sshll.u32 (%p29_p3), %s129_s20, 4 }
  0x10   : > { %s134_s25 = scalar_lea.vmem (%p29_p3), %s835_s0, %s611_s21  ;;  %s131_s26 = scalar_lea.vmem (%p29_p3), [#allocation3], %s565_s22 }
  0x11   : > { %v164_v0 = vld [vmem:[%s134_s25] sm:$0xff] (%p29_p3) }
  0x12   : > { %v166_v1 = vld [vmem:[%s134_s25 + $0x20] sm:$0xff] (%p29_p3)  ;;  %165 = vst [vmem:[%s131_s26] sm:$0xff] (%p29_p3), %v164_v0 }
  0x13   : > { %167 = vst [vmem:[%s131_s26 + $0x8] sm:$0xff] (%p29_p3), %v166_v1 }
  0x15 PF: > { %p568_p5 = scmp.ge.s32.totalorder %s711_s14, 1  ;;  %p182_p6 = scmp.lt.s32.totalorder %s711_s14, 5 }
  0x17   : > { %p183_p7 = pnand %p568_p5, %p182_p6 }
  0x18   : > { %s189_s27 = sand.u32 (!%p183_p7), 1, %s703_s12   ;;  %s570_s28 = sshll.u32 (!%p183_p7), %s747_s15, 5 }
  0x19   : > { %186 = sbr.rel (%p183_p7) target bundleno = 332 (0x14c), region = 66  ;;  %s764_s29 = sshll.u32 (!%p183_p7), %s189_s27, 4 }
  0x1a   : > { %p215_p8 = scmp.lt.s32.totalorder (!%p183_p7), %s570_s28, 127  ;;  %s191_s7 = scalar_lea.vmem (!%p183_p7), [#allocation3], %s764_s29 }
  0x1b   : > { %p573_p9 = scmp.ne.s32.totalorder (!%p183_p7), %s747_s15, 0 }
  0x20   : > { %s843_s28 = smov (!%p215_p8, %s570_s28), 127  ;;  %224 = sbr.rel (%p573_p9) target bundleno = 39 (0x27), region = 74 }
  0x21   : > { %s612_s30 = sshll.u32 %s843_s28, 3  ;;  %v713_v2 = vmov (!%p573_p9), 0.0  }
  0x22   : > { %s769_s6 = scalar_lea.vmem %s836_s1, %s612_s30  ;;  %225 = vst [vmem:[#allocation2] sm:$0xff] (!%p573_p9), %v713_v2  ;;  %226 = vst [vmem:[#allocation2 + $0x8] sm:$0xff] (!%p573_p9), %v713_v2 }
  0x23   : > { %227 = vst [vmem:[#allocation2 + $0x10] sm:$0xff] (!%p573_p9), %v713_v2  ;;  %228 = vst [vmem:[#allocation2 + $0x18] sm:$0xff] (!%p573_p9), %v713_v2 }
  0x27 PF: > { %v638_v3 = vld [vmem:[%s769_s6 + $0x4] ss:$8 sps:$4 sm:$0xff]   ;;  %v640_v4 = vld [vmem:[%s769_s6] ss:$8 sps:$4 sm:$0xff]   ;;  %v641_v5 = vld [vmem:[%s769_s6 + $0x14] ss:$8 sps:$4 sm:$0xff]  }
  0x28   : > { %437 = vmatprep.subr.bf16.mxu0 %v638_v3  ;;  %v643_v6 = vld [vmem:[%s769_s6 + $0x10] ss:$8 sps:$4 sm:$0xff]   ;;  %v644_v7 = vld [vmem:[%s769_s6 + $0x24] ss:$8 sps:$4 sm:$0xff]   ;;  %v646_v8 = vld [vmem:[%s769_s6 + $0x20] ss:$8 sps:$4 sm:$0xff]  }
  0x29   : > { %438 = vmatpush1.bf16.msra.mxu0 %v640_v4  ;;  %v647_v9 = vld [vmem:[%s769_s6 + $0x34] ss:$8 sps:$4 sm:$0xff]   ;;  %v649_v10 = vld [vmem:[%s769_s6 + $0x30] ss:$8 sps:$4 sm:$0xff]   ;;  %v650_v11 = vld [vmem:[%s769_s6 + $0x44] ss:$8 sps:$4 sm:$0xff]  }
  0x2a   : > { %439 = vmatprep.subr.bf16.mxu0 %v641_v5  ;;  %v652_v12 = vld [vmem:[%s769_s6 + $0x40] ss:$8 sps:$4 sm:$0xff]   ;;  %v653_v13 = vld [vmem:[%s769_s6 + $0x54] ss:$8 sps:$4 sm:$0xff]   ;;  %v655_v14 = vld [vmem:[%s769_s6 + $0x50] ss:$8 sps:$4 sm:$0xff]  }
  0x2b   : > { %v656_v15 = vld [vmem:[%s769_s6 + $0x64] ss:$8 sps:$4 sm:$0xff]   ;;  %v658_v17 = vld [vmem:[%s769_s6 + $0x60] ss:$8 sps:$4 sm:$0xff]   ;;  %v659_v18 = vld [vmem:[%s769_s6 + $0x74] ss:$8 sps:$4 sm:$0xff]  }
  0x2c   : > { %v688_v16 = vld [vmem:[%s191_s7 + $0x4] ss:$8 sps:$4 sm:$0xff]   ;;  %v661_v19 = vld [vmem:[%s769_s6 + $0x70] ss:$8 sps:$4 sm:$0xff]   ;;  %v664_v21 = vld [vmem:[%s769_s6 + $0x80] ss:$8 sps:$4 sm:$0xff]  }
  0x2d   : > { %440 = vmatpush1.bf16.msra.mxu0 %v643_v6  ;;  %469 = vmatprep.mubr.bf16.mxu0 %v688_v16  ;;  %v662_v20 = vld [vmem:[%s769_s6 + $0x84] ss:$8 sps:$4 sm:$0xff]   ;;  %v665_v22 = vld [vmem:[%s769_s6 + $0x94] ss:$8 sps:$4 sm:$0xff]   ;;  %v667_v23 = vld [vmem:[%s769_s6 + $0x90] ss:$8 sps:$4 sm:$0xff]  }
  0x2e   : > { %441 = vmatprep.subr.bf16.mxu0 %v644_v7  ;;  %v668_v24 = vld [vmem:[%s769_s6 + $0xa4] ss:$8 sps:$4 sm:$0xff]   ;;  %v670_v25 = vld [vmem:[%s769_s6 + $0xa0] ss:$8 sps:$4 sm:$0xff]   ;;  %v671_v26 = vld [vmem:[%s769_s6 + $0xb4] ss:$8 sps:$4 sm:$0xff]  }
  0x2f   : > { %v673_v27 = vld [vmem:[%s769_s6 + $0xb0] ss:$8 sps:$4 sm:$0xff]   ;;  %v674_v28 = vld [vmem:[%s769_s6 + $0xc4] ss:$8 sps:$4 sm:$0xff]   ;;  %v676_v29 = vld [vmem:[%s769_s6 + $0xc0] ss:$8 sps:$4 sm:$0xff]  }
  0x30   : > { %v677_v30 = vld [vmem:[%s769_s6 + $0xd4] ss:$8 sps:$4 sm:$0xff]   ;;  %v679_v31 = vld [vmem:[%s769_s6 + $0xd0] ss:$8 sps:$4 sm:$0xff]   ;;  %v680_v32 = vld [vmem:[%s769_s6 + $0xe4] ss:$8 sps:$4 sm:$0xff]  }
  0x31   : > { %442 = vmatpush1.bf16.msra.mxu0 %v646_v8  ;;  %v682_v33 = vld [vmem:[%s769_s6 + $0xe0] ss:$8 sps:$4 sm:$0xff]   ;;  %v683_v34 = vld [vmem:[%s769_s6 + $0xf4] ss:$8 sps:$4 sm:$0xff]   ;;  %v685_v35 = vld [vmem:[%s769_s6 + $0xf0] ss:$8 sps:$4 sm:$0xff]  }
  0x32   : > { %443 = vmatprep.subr.bf16.mxu0 %v647_v9  ;;  %v686_v36 = vld [vmem:[%s191_s7] ss:$8 sps:$4 sm:$0xff]   ;;  %p608_p10 = scmp.ne.s32.totalorder %s747_s15, 3 }
  0x33   : > { %v229_v37 = vld [vmem:[#allocation2] sm:$0xff]  ;;  %v230_v38 = vld [vmem:[#allocation2 + $0x8] sm:$0xff]  ;;  %v231_v40 = vld [vmem:[#allocation2 + $0x10] sm:$0xff]  ;;  %v498_v49 = vlaneseq (!%p608_p10) }
  0x34   : > { %v232_v43 = vld [vmem:[#allocation2 + $0x18] sm:$0xff]  ;;  %v496_v51 = vld [vmem:[%s837_s2] sm:$0x3] (!%p608_p10) }
  0x35   : > { %444 = vmatpush1.bf16.msra.mxu0 %v649_v10  ;;  %v499_v50 = vshrl.u32 (!%p608_p10), %v498_v49, 7 }
  0x36   : > { %445 = vmatprep.subr.bf16.mxu0 %v650_v11 }
  0x37   : > { %v500_v53 = vsub.s32 (!%p608_p10), 0, %v499_v50  ;;  %v504_v54 = vsub.s32 (!%p608_p10), 1, %v499_v50 }
  0x39   : > { %446 = vmatpush1.bf16.msra.mxu0 %v652_v12  ;;  %v501_v58 = vrot.slane (!%p608_p10), %v496_v51, %v500_v53  ;;  %v505_v59 = vrot.slane (!%p608_p10), %v496_v51, %v504_v54 }
  0x3a   : > { %447 = vmatprep.subr.bf16.mxu0 %v653_v13 }
  0x3d   : > { %448 = vmatpush1.bf16.msra.mxu0 %v655_v14 }
  0x3e   : > { %449 = vmatprep.subr.bf16.mxu0 %v656_v15 }
  0x41   : > { %450 = vmatpush1.bf16.msra.mxu0 %v658_v17 }
  0x42   : > { %451 = vmatprep.subr.bf16.mxu0 %v659_v18 }
  0x45   : > { %452 = vmatpush1.bf16.msra.mxu0 %v661_v19 }
  0x46   : > { %453 = vmatprep.subr.bf16.mxu0 %v662_v20 }
  0x49   : > { %454 = vmatpush1.bf16.msra.mxu0 %v664_v21 }
  0x4a   : > { %455 = vmatprep.subr.bf16.mxu0 %v665_v22 }
  0x4d   : > { %456 = vmatpush1.bf16.msra.mxu0 %v667_v23 }
  0x4e   : > { %457 = vmatprep.subr.bf16.mxu0 %v668_v24 }
  0x51   : > { %458 = vmatpush1.bf16.msra.mxu0 %v670_v25 }
  0x52   : > { %459 = vmatprep.subr.bf16.mxu0 %v671_v26 }
  0x55   : > { %460 = vmatpush1.bf16.msra.mxu0 %v673_v27 }
  0x56   : > { %461 = vmatprep.subr.bf16.mxu0 %v674_v28 }
  0x59   : > { %462 = vmatpush1.bf16.msra.mxu0 %v676_v29 }
  0x5a   : > { %463 = vmatprep.subr.bf16.mxu0 %v677_v30 }
  0x5d   : > { %464 = vmatpush1.bf16.msra.mxu0 %v679_v31 }
  0x5e   : > { %465 = vmatprep.subr.bf16.mxu0 %v680_v32 }
  0x61   : > { %466 = vmatpush1.bf16.msra.mxu0 %v682_v33 }
  0x62   : > { %467 = vmatprep.subr.bf16.mxu0 %v683_v34 }
  0x65   : > { %468 = vmatpush1.bf16.msra.mxu0 %v685_v35 }
  0x68   : > { %470 = vmatmul.mubr.bf16.vlgmr.msra.gmra.mrb[0].mxu0 %v686_v36 }
 0x13b   : > { %v471_v39 = vpop.f32.mrb[0].mxu0  ;;  %491 = sbr.rel (%p608_p10) target bundleno = 332 (0x14c), region = 78 }
 0x13c   : > { %v480_v41 = vadd.f32 %v471_v39, %v229_v37  ;;  %v473_v42 = vpop.f32.mrb[1].mxu0 }
 0x13d   : > { %v481_v44 = vadd.f32 %v473_v42, %v230_v38  ;;  %v475_v45 = vpop.f32.mrb[2].mxu0 }
 0x13e   : > { %484 = vst [vmem:[#allocation2] sm:$0xff] %v480_v41  ;;  %v482_v46 = vadd.f32 %v475_v45, %v231_v40  ;;  %v477_v47 = vpop.f32.mrb[3].mxu0 }
 0x13f   : > { %485 = vst [vmem:[#allocation2 + $0x8] sm:$0xff] %v481_v44  ;;  %v483_v48 = vadd.f32 %v477_v47, %v232_v43 }
 0x140   : > { %486 = vst [vmem:[#allocation2 + $0x10] sm:$0xff] %v482_v46 }
 0x141   : > { %487 = vst [vmem:[#allocation2 + $0x18] sm:$0xff] %v483_v48 }
 0x145   : > { %v492_v52 = vld [vmem:[#allocation2] sm:$0xff] }
 0x146   : > { %v493_v55 = vld [vmem:[#allocation2 + $0x8] sm:$0xff]  ;;  %v508_v60 = vadd.f32 %v501_v58, %v492_v52 }
 0x147   : > { %v494_v56 = vld [vmem:[#allocation2 + $0x10] sm:$0xff]  ;;  %v509_v61 = vadd.f32 %v505_v59, %v493_v55 }
 0x148   : > { %v495_v57 = vld [vmem:[#allocation2 + $0x18] sm:$0xff]  ;;  %v510_v62 = vadd.f32 %v501_v58, %v494_v56  ;;  %512 = vst [vmem:[%s838_s3] sm:$0xff] %v508_v60 }
 0x149   : > { %v511_v63 = vadd.f32 %v505_v59, %v495_v57  ;;  %513 = vst [vmem:[%s838_s3 + $0x8] sm:$0xff] %v509_v61 }
 0x14a   : > { %514 = vst [vmem:[%s838_s3 + $0x10] sm:$0xff] %v510_v62 }
 0x14b   : > { %515 = vst [vmem:[%s838_s3 + $0x18] sm:$0xff] %v511_v63 }
 0x14c PF: > { %p10_p11 = scmp.ge.s32.totalorder %s749_s16, 6   ;;  %s839_s12 = smov %s707_s13 }
 0x14d   : > { %s840_s13 = smov %s756_s19  ;;  %s841_s14 = smov %s749_s16 }
 0x14e   :  { %12 = sbr.rel (!%p10_p11) target bundleno = 2 (0x2), region = 112 }

</bundles_post_ra>
